<compile_context>
chip_gen: v7x
topology: tpu7x:2x2x1
jax: 0.10.0
libtpu: 0.0.40
codegen_flags: <defaults>
</compile_context>

<pallas_src>
import jax
import jax.numpy as jnp
from jax.experimental import pallas as pl
from jax.experimental.pallas import tpu as pltpu


def _round_up(n, m):
    return ((n + m - 1) // m) * m


def _mean_emb_classifier_kernel(x_ref, w_ref, b_ref, o_ref):
    # x_ref: (TBp, Dp)  VMEM -- packed batch tile (G original rows per 128-lane row)
    # w_ref: (Dp, G)    VMEM -- block-diagonal weight: column j dots packed segment j
    # b_ref: (1,)   f32 SMEM -- scalar bias
    # o_ref: (TBp, G) f32 VMEM -- sigmoid(z) in natural layout (no lane relayout)
    #
    # Contraction on the (otherwise idle) MXU with f32 accumulation; the previous
    # VPU-multiply + XLU lane-reduce + sublane->lane output relayout is gone.
    z = jnp.dot(x_ref[...], w_ref[...], preferred_element_type=jnp.float32) + b_ref[0]
    o_ref[...] = jax.nn.sigmoid(z)


def _pick_tile(packed_rows, row_bytes, sub, tb_packed):
    """Tile size in packed rows: largest tile under ~12 MiB, multiple of `sub` sublanes."""
    if tb_packed is not None:
        return max(sub, _round_up(tb_packed, sub))
    rows_all = _round_up(packed_rows, sub)
    # ~12 MiB per x tile -> <= ~26 MiB double-buffered: fits every generation's VMEM
    # (incl. v7x) with headroom and amortizes the ~0.35 us per-grid-step overhead.
    cap = max(sub, ((12 * 1024 * 1024) // row_bytes) // sub * sub)
    tbp = min(rows_all, cap)
    # On large batches keep >= 4 grid steps so the "parallel" axis can shard across
    # v7x's two TensorCores and the DMA pipeline stays full; never below ~1k-row tiles.
    if rows_all >= 4 * 1024:
        tbp = min(tbp, max(1024, _round_up(pl.cdiv(rows_all, 4), sub)))
    return tbp


def mean_embedding_classifier(x, w, b, *, tb=None, input_dtype=None):
    """sigmoid(x @ w.T + b).  x: [B, D], w: [1, D], b: [1]  ->  [B, 1] float32.

    tb:          optional tile size in (original) batch rows.
    input_dtype: optional dtype for x / w inside the kernel (e.g. jnp.bfloat16 halves
                 the HBM traffic of this HBM-bound op; accumulation stays f32).
    """
    B, D = x.shape
    dtype = jnp.dtype(input_dtype) if input_dtype is not None else jnp.dtype(x.dtype)
    x = x.astype(dtype)
    w_flat = jnp.asarray(w).astype(dtype).reshape(D)
    b_s = jnp.asarray(b, jnp.float32).reshape(1)

    # Lane packing: when D divides 128, fold G = 128 // D batch rows into each 128-lane
    # row (free row-major reshape) so every DMA row is a dense 128-lane burst and the
    # MXU sees full vregs instead of 4x lane-padded waste (D = 32 -> G = 4).
    G = 128 // D if (D < 128 and 128 % D == 0) else 1
    Dp = G * D
    # Block-diagonal (Dp, G) weight: W[j*D + d, j] = w[d]; column j dots packed segment j.
    w_packed = (jnp.eye(G, dtype=dtype)[:, None, :] * w_flat[None, :, None]).reshape(Dp, G)

    itemsize = jnp.dtype(dtype).itemsize
    sub = {4: 8, 2: 16}.get(itemsize, 32)            # native sublane granularity
    lane_w = _round_up(Dp, 128)                       # lane-padded width actually in VMEM
    packed_rows = pl.cdiv(B, G)
    tbp = _pick_tile(packed_rows, lane_w * itemsize, sub,
                     None if tb is None else pl.cdiv(tb, G))
    n_tiles = pl.cdiv(packed_rows, tbp)
    bp = n_tiles * tbp                                # packed rows incl. padding
    b_pad = bp * G                                    # original rows incl. padding
    if b_pad != B:
        x = jnp.pad(x, ((0, b_pad - B), (0, 0)))      # pad rows -> sigmoid(b), sliced off
    x_packed = x.reshape(bp, Dp)

    tile_bytes = tbp * lane_w * itemsize
    vmem_limit = int(min(56 << 20, max(32 << 20, 2 * tile_bytes + (2 << 20))))

    out = pl.pallas_call(
        _mean_emb_classifier_kernel,
        out_shape=jax.ShapeDtypeStruct((bp, G), jnp.float32),
        grid_spec=pltpu.PrefetchScalarGridSpec(
            num_scalar_prefetch=0,
            grid=(n_tiles,),
            in_specs=[
                # NOTE: for tiny *forced* tiles on v7x, pipeline_mode=pl.Buffered(3) here
                # would hide DMA-issue latency; default tiles are large so depth 2 is fine.
                pl.BlockSpec((tbp, Dp), lambda i: (i, 0)),               # x tile (streamed)
                pl.BlockSpec((Dp, G), lambda i: (0, 0)),                 # weight (resident)
                pl.BlockSpec(memory_space=pltpu.MemorySpace.SMEM),       # bias scalar
            ],
            out_specs=pl.BlockSpec((tbp, G), lambda i: (i, 0)),          # natural layout
        ),
        compiler_params=pltpu.CompilerParams(
            dimension_semantics=("parallel",),
            vmem_limit_bytes=vmem_limit,
        ),
        cost_estimate=pl.CostEstimate(
            flops=2 * b_pad * D,
            transcendentals=2 * b_pad,                 # sigmoid ~ exp + reciprocal
            bytes_accessed=itemsize * (b_pad * D + Dp * G) + 4 * (b_pad + 1),
        ),
    )(x_packed, w_packed, b_s)

    # Row-major (bp, G) -> (b_pad, 1) restores the original batch order; drop padding.
    return out.reshape(b_pad, 1)[:B]


if __name__ == "__main__":
    key = jax.random.PRNGKey(0)
    k_x, k_w, k_b, k_x2 = jax.random.split(key, 4)

    # Small shapes consistent with the module: batch=8, embedding_dim=32.
    B, D = 8, 32

    # Deterministic parameter init mirroring nn.Linear's U(-1/sqrt(D), 1/sqrt(D)).
    bound = 1.0 / (D ** 0.5)
    w = jax.random.uniform(k_w, (1, D), jnp.float32, minval=-bound, maxval=bound)
    b = jax.random.uniform(k_b, (1,), jnp.float32, minval=-bound, maxval=bound)
    x = jax.random.normal(k_x, (B, D), jnp.float32)
    ref = jax.nn.sigmoid(x @ w.T + b)

    out = jax.block_until_ready(mean_embedding_classifier(x, w, b))
    assert out.shape == (B, 1)
    assert jnp.allclose(out, ref, atol=1e-5, rtol=1e-5)

    # Multi-tile (grid > 1) + batch-padding path with a forced, non-multiple-of-8 tile.
    B2 = 300
    x2 = jax.random.normal(k_x2, (B2, D), jnp.float32)
    ref2 = jax.nn.sigmoid(x2 @ w.T + b)
    out2 = jax.block_until_ready(mean_embedding_classifier(x2, w, b, tb=100))
    assert out2.shape == (B2, 1)
    assert jnp.allclose(out2, ref2, atol=1e-5, rtol=1e-5)

    # Optional bf16 input path (halves HBM traffic on this purely memory-bound op).
    out_bf = jax.block_until_ready(
        mean_embedding_classifier(x2, w, b, input_dtype=jnp.bfloat16))
    assert out_bf.shape == (B2, 1)
    assert jnp.allclose(out_bf, ref2, atol=2e-2, rtol=2e-2)

    print("KERNEL_OK")
</pallas_src>

<mosaic_0001>
module attributes {stable_mosaic.version = 11 : i64} {
  func.func @_mean_emb_classifier_kernel(%arg0: i32, %arg1: memref<8x128xf32, #tpu.memory_space<vmem>>, %arg2: memref<128x4xf32, #tpu.memory_space<vmem>>, %arg3: memref<1xf32, #tpu.memory_space<smem>>, %arg4: memref<8x4xf32, #tpu.memory_space<vmem>>) attributes {dimension_semantics = [#tpu.dimension_semantics<parallel>], iteration_bounds = array<i64: 1>, scalar_prefetch = 0 : i64, scratch_operands = 0 : i64, tpu.core_type = #tpu.core_type<tc>, window_params = [{transform_indices = @transform_0, window_bounds = array<i64: 8, 128>}, {pipeline_mode = #tpu.pipeline_mode<synchronous>, transform_indices = @transform_1, window_bounds = array<i64: 128, 4>}, {transform_indices = @transform_2, window_bounds = array<i64: 1>}, {transform_indices = @transform_3, window_bounds = array<i64: 8, 4>}]} {
    %c0 = arith.constant 0 : index
    %c0_0 = arith.constant 0 : index
    %0 = vector.load %arg1[%c0, %c0_0] : memref<8x128xf32, #tpu.memory_space<vmem>>, vector<8x128xf32>
    %c0_1 = arith.constant 0 : index
    %c0_2 = arith.constant 0 : index
    %1 = vector.load %arg2[%c0_1, %c0_2] : memref<128x4xf32, #tpu.memory_space<vmem>>, vector<128x4xf32>
    %cst = arith.constant dense<0.000000e+00> : vector<8x4xf32>
    %2 = tpu.matmul %0, %1, %cst {dimension_numbers = #tpu.dot_dimension_numbers<[1], [0], [0], [1], [0, 0, 1, 1], [], []>} : vector<8x128xf32>, vector<128x4xf32>, vector<8x4xf32> -> vector<8x4xf32>
    %c0_3 = arith.constant 0 : index
    %3 = memref.load %arg3[%c0_3] : memref<1xf32, #tpu.memory_space<smem>>
    %4 = vector.broadcast %3 : f32 to vector<8x4xf32>
    %5 = arith.addf %2, %4 : vector<8x4xf32>
    %6 = arith.negf %5 : vector<8x4xf32>
    %7 = math.exp %6 : vector<8x4xf32>
    %cst_4 = arith.constant 1.000000e+00 : f32
    %8 = vector.broadcast %cst_4 : f32 to vector<8x4xf32>
    %9 = arith.addf %8, %7 : vector<8x4xf32>
    %10 = arith.divf %8, %9 : vector<8x4xf32>
    %c0_5 = arith.constant 0 : index
    %c0_6 = arith.constant 0 : index
    %11 = vector.load %arg4[%c0_5, %c0_6] : memref<8x4xf32, #tpu.memory_space<vmem>>, vector<8x4xf32>
    tpu.vector_store %arg4[%c0_5, %c0_6], %10 {strides = array<i32>} : memref<8x4xf32, #tpu.memory_space<vmem>>, vector<8x4xf32>,
    return
  }
  func.func @transform_0(%arg0: i32) -> (i32, i32) {
    %c0_i32 = arith.constant 0 : i32
    %c0_i32_0 = arith.constant 0 : i32
    return %arg0, %c0_i32 : i32, i32
  }
  func.func @transform_1(%arg0: i32) -> (i32, i32) {
    %c0_i32 = arith.constant 0 : i32
    %c0_i32_0 = arith.constant 0 : i32
    %c0_i32_1 = arith.constant 0 : i32
    return %c0_i32, %c0_i32_0 : i32, i32
  }
  func.func @transform_2(%arg0: i32) -> i32 {
    %c0_i32 = arith.constant 0 : i32
    %c0_i32_0 = arith.constant 0 : i32
    return %c0_i32 : i32
  }
  func.func @transform_3(%arg0: i32) -> (i32, i32) {
    %c0_i32 = arith.constant 0 : i32
    %c0_i32_0 = arith.constant 0 : i32
    return %arg0, %c0_i32 : i32, i32
  }
}

</mosaic_0001>

<bundles_post_ra>
// kernel: tpu_custom_call.1
= control target key start
LH: loop header
LB: loop body
LE: loop exit
PB: predicated region body
PF: predicated region fallthrough
CT: control target
= control target key end

     0   :  { %v200_v0 = vmov 0.0|0.0   ;;  %vm201_vm0 = vmmov 0   ;;  %v202_v4 = vmov 0.0   ;;  %vm110_vm1 = vcmask 31744   ;;  %s280_s1 = inlined_call_operand.vmem [shape: f32[128,4], index: 1, kind: input, shape index: {}]   ;;  %s281_s0 = inlined_call_operand.vmem [shape: f32[8,128], index: 0, kind: input, shape index: {}]   ;;  %s282_s2 = inlined_call_operand.<no memory space> [shape: f32[1], index: 2, kind: input, shape index: {}]   ;;  %s283_s3 = inlined_call_operand.vmem [shape: f32[8,4], index: 3, kind: output, shape index: {}]  }
   0x1   :  { %169 = vmatprep.subr.bf16.mxu0 %v200_v0  ;;  %v16_v1 = vld [vmem:[%s280_s1] sm:$0xff]  ;;  %v17_v2 = vld [vmem:[%s280_s1 + $0x8] sm:$0xff]  ;;  %v18_v3 = vld [vmem:[%s280_s1 + $0x10] sm:$0xff]  ;;  %166 = vmatprep.mubr.msk.f32.mxu0 %vm201_vm0, %v202_v4  ;;  %v33_v27 = vstv %s282_s2 }
   0x2   :  { %v170_v5 = vpack.c.bf16 %v17_v2, %v16_v1  ;;  %v19_v6 = vld [vmem:[%s280_s1 + $0x18] sm:$0xff]  ;;  %v20_v8 = vld [vmem:[%s280_s1 + $0x20] sm:$0xff]  ;;  %v21_v9 = vld [vmem:[%s280_s1 + $0x28] sm:$0xff] }
   0x3   :  { %v173_v7 = vpack.c.bf16 %v19_v6, %v18_v3  ;;  %v176_v10 = vpack.c.bf16 %v21_v9, %v20_v8  ;;  %v22_v11 = vld [vmem:[%s280_s1 + $0x30] sm:$0xff]  ;;  %v23_v12 = vld [vmem:[%s280_s1 + $0x38] sm:$0xff]  ;;  %v24_v14 = vld [vmem:[%s280_s1 + $0x40] sm:$0xff] }
   0x4   :  { %171 = vmatpush3.bf16.msra.mxu0 %v170_v5  ;;  %v179_v13 = vpack.c.bf16 %v23_v12, %v22_v11  ;;  %v25_v15 = vld [vmem:[%s280_s1 + $0x48] sm:$0xff]  ;;  %v26_v17 = vld [vmem:[%s280_s1 + $0x50] sm:$0xff]  ;;  %v27_v18 = vld [vmem:[%s280_s1 + $0x58] sm:$0xff] }
   0x5   :  { %172 = vmatprep.subr.bf16.mxu0 %v200_v0  ;;  %v182_v16 = vpack.c.bf16 %v25_v15, %v24_v14  ;;  %v185_v19 = vpack.c.bf16 %v27_v18, %v26_v17  ;;  %v28_v20 = vld [vmem:[%s280_s1 + $0x60] sm:$0xff]  ;;  %v29_v21 = vld [vmem:[%s280_s1 + $0x68] sm:$0xff]  ;;  %v30_v23 = vld [vmem:[%s280_s1 + $0x70] sm:$0xff] }
   0x6   :  { %v188_v22 = vpack.c.bf16 %v29_v21, %v28_v20  ;;  %v31_v24 = vld [vmem:[%s280_s1 + $0x78] sm:$0xff]  ;;  %v15_v26 = vld [vmem:[%s281_s0] sm:$0xff] }
   0x7   :  { %v191_v25 = vpack.c.bf16 %v31_v24, %v30_v23 }
   0x8   :  { %174 = vmatpush3.bf16.msra.mxu0 %v173_v7 }
   0x9   :  { %175 = vmatprep.subr.bf16.mxu0 %v200_v0 }
   0xc   :  { %177 = vmatpush3.bf16.msra.mxu0 %v176_v10 }
   0xd   :  { %178 = vmatprep.subr.bf16.mxu0 %v200_v0 }
  0x10   :  { %180 = vmatpush3.bf16.msra.mxu0 %v179_v13 }
  0x11   :  { %181 = vmatprep.subr.bf16.mxu0 %v200_v0 }
  0x14   :  { %183 = vmatpush3.bf16.msra.mxu0 %v182_v16 }
  0x15   :  { %184 = vmatprep.subr.bf16.mxu0 %v200_v0 }
  0x18   :  { %186 = vmatpush3.bf16.msra.mxu0 %v185_v19 }
  0x19   :  { %187 = vmatprep.subr.bf16.mxu0 %v200_v0 }
  0x1c   :  { %189 = vmatpush3.bf16.msra.mxu0 %v188_v22 }
  0x1d   :  { %190 = vmatprep.subr.bf16.mxu0 %v200_v0 }
  0x20   :  { %192 = vmatpush3.bf16.msra.mxu0 %v191_v25 }
  0x23   :  { %167 = vmatmul.mubr.f32.vlgmr.msra.gmra.mrb[0].mxu0 %v15_v26 }
  0xf6   :  { %v100_v28 = vpop.f32.mrb[0].mxu0 }
  0xf7   :  { %v101_v29 = vadd.f32 %v100_v28, %v33_v27  ;;  %v168_v30 = vpop.f32.mrb[1].mxu0 }
  0xf9   :  { %v116_v31 = vmul.f32 -1.442695, %v101_v29 }
  0xfb   :  { %196 = vpow2.f32 %v116_v31 }
 0x105   :  { %v197_v32 = vpop.eup %196 }
 0x106   :  { %v107_v33 = vadd.f32 1.0, %v197_v32 }
 0x108   :  { %198 = vrcp.f32 %v107_v33 }
 0x112   :  { %v199_v34 = vpop.eup %198 }
 0x113   :  { %111 = vst.msk [vmem:[%s283_s3] sm:$0xff] %vm110_vm1, %v199_v34 }

</bundles_post_ra>
